<compile_context>
chip_gen: v7x
topology: tpu7x:2x2x1
jax: 0.10.0
libtpu: 0.0.40
codegen_flags: <defaults>
</compile_context>

<pallas_src>
import functools

import jax
import jax.numpy as jnp
from jax.experimental import pallas as pl
from jax.experimental.pallas import tpu as pltpu

VOCAB = 25002
EMBED = 100
LANES = 128  # embedding dim padded to the 128-lane vreg width


def _gather_pool_linear_kernel(idx_ref, w_ref, b_ref, table_ref,
                               out_ref, slab_ref, sem, *, B, S):
    """Gather B*S embedding rows from HBM, mean-pool over seq, Linear(E->1).

    idx_ref   : (B, S)        int32, SMEM  token ids (clamped in-kernel)
    w_ref     : (1, EP)       f32,   VMEM  Linear weight, zero padded to EP lanes
    b_ref     : (1,)          f32,   SMEM  Linear bias
    table_ref : (V, EP)       f32,   HBM   embedding table, zero padded to EP lanes
    out_ref   : (B, 1)        f32,   VMEM
    slab_ref  : (BS_PAD, EP)  f32,   VMEM  scratch holding the gathered rows
    sem       : single shared DMA semaphore for all row gathers
    """
    V, EP = table_ref.shape
    BS = B * S

    # Issue every row-gather DMA up front on the shared semaphore so all HBM
    # round-trips overlap.  Ids are clamped with scalar min/max so a bad token
    # can never DMA out of bounds (PyTorch would raise instead; see notes).
    for b in range(B):          # static unroll; B*S is small
        for s in range(S):
            k = b * S + s
            row = jnp.minimum(jnp.maximum(idx_ref[b, s], 0), V - 1)
            pltpu.make_async_copy(
                table_ref.at[pl.ds(row, 1), :],
                slab_ref.at[pl.ds(k, 1), :],
                sem,
            ).start()

    # Scalar read before the wait (keeps SMEM sst->sld forwarding intact).
    bias = b_ref[0]

    # Single aggregate wait: the DMA semaphore counts bytes, so one descriptor
    # covering all BS gathered rows replaces BS serialized waits.
    pltpu.make_async_copy(
        table_ref.at[pl.ds(0, BS), :],
        slab_ref.at[pl.ds(0, BS), :],
        sem,
    ).wait()

    # AvgPool2d((S, 1)) on the NCHW reshape == mean over the sequence axis.
    # (BS, EP) -> (B, S, EP) is a pure layout reinterpretation when S % 8 == 0
    # (split lands exactly on the sublane-tile boundary); padding rows of the
    # scratch (if any) are never read, so no zero-fill is needed.
    emb = slab_ref[...][:BS].reshape(B, S, EP)
    pooled = jnp.sum(emb, axis=1) * jnp.float32(1.0 / S)            # (B, EP)

    # Linear(100 -> 1): lane reduction against the zero-padded weight row.
    out_ref[...] = jnp.sum(pooled * w_ref[...], axis=1, keepdims=True) + bias


def prepare_net_params(table, w, bias):
    """One-time parameter preprocessing (NOT per forward pass):
    zero-pad the embedding dim from 100 to 128 lanes."""
    _, E = table.shape
    table_p = jnp.pad(table.astype(jnp.float32), ((0, 0), (0, LANES - E)))
    w_p = jnp.pad(jnp.asarray(w, jnp.float32).reshape(1, E),
                  ((0, 0), (0, LANES - E)))
    return table_p, w_p, jnp.asarray(bias, jnp.float32).reshape(1)


def net_forward(x, table_p, w_p, bias):
    """x: (B, S) integer token ids.  Params from prepare_net_params.
    Returns (B, 1, 1, 1) f32, matching the PyTorch NET forward."""
    B, S = x.shape
    BS = B * S
    BS_pad = ((BS + 7) // 8) * 8
    _, EP = table_p.shape

    kernel = functools.partial(_gather_pool_linear_kernel, B=B, S=S)

    # TODO(synk): for large B*S, store the table in bf16 (halves gather bytes),
    # add a batch-parallel grid (dimension_semantics=("parallel",)) with small
    # double-buffered slab tiles for v7x's 2 TensorCores / 64 MiB VMEM, and a
    # lane-dense (1, B) output; all unnecessary at B=2, S=8 where the kernel is
    # pure DMA-issue/latency bound.
    out = pl.pallas_call(
        kernel,
        out_shape=jax.ShapeDtypeStruct((B, 1), jnp.float32),
        in_specs=[
            pl.BlockSpec(memory_space=pltpu.MemorySpace.SMEM),  # token ids
            pl.BlockSpec(memory_space=pltpu.MemorySpace.VMEM),  # linear weight
            pl.BlockSpec(memory_space=pltpu.MemorySpace.SMEM),  # linear bias
            pl.BlockSpec(memory_space=pl.ANY),                  # embedding table stays in HBM
        ],
        out_specs=pl.BlockSpec(memory_space=pltpu.MemorySpace.VMEM),
        scratch_shapes=[
            pltpu.VMEM((BS_pad, EP), jnp.float32),   # gathered-row slab
            pltpu.SemaphoreType.DMA,                 # one shared sem for all row DMAs
        ],
    )(x.astype(jnp.int32), w_p, bias, table_p)
    return out.reshape(B, 1, 1, 1)


if __name__ == "__main__":
    key = jax.random.PRNGKey(0)
    k1, k2, k3, k4 = jax.random.split(key, 4)

    B, S = 2, 8  # seq_len = 8 (constructor arg of NET)

    # Deterministic synthetic parameters (shapes from NET.__init__)
    table = jax.random.normal(k1, (VOCAB, EMBED), jnp.float32) * 0.1
    table = table.at[1].set(0.0)            # padding_idx=1 row zeroed (nn.Embedding init)
    w = jax.random.normal(k2, (1, EMBED), jnp.float32) * 0.1   # Linear(100, 1).weight
    bias = jax.random.normal(k3, (1,), jnp.float32) * 0.1      # Linear(100, 1).bias

    # Example input: (B, S) token ids, include the padding index once
    x = jax.random.randint(k4, (B, S), 0, VOCAB, dtype=jnp.int32)
    x = x.at[0, 0].set(1)

    # One-time parameter prep (pad E 100 -> 128); not part of the per-call path.
    table_p, w_p, bias_p = prepare_net_params(table, w, bias)

    out = net_forward(x, table_p, w_p, bias_p)
    out = jax.block_until_ready(out)

    # Pure-JAX reference of the PyTorch forward
    emb = table[x]                         # (B, S, E)
    pooled = emb.mean(axis=1)              # AvgPool2d((S, 1)) over the seq axis
    ref = (pooled @ w[0] + bias[0]).reshape(B, 1, 1, 1)

    assert out.shape == (B, 1, 1, 1), out.shape
    assert jnp.allclose(out, ref, atol=1e-5, rtol=1e-5), (out, ref)
    print("KERNEL_OK")
</pallas_src>

<mosaic_0001>
module attributes {stable_mosaic.version = 11 : i64} {
  func.func @_gather_pool_linear_kernel(%arg0: memref<2x8xi32, #tpu.memory_space<smem>>, %arg1: memref<1x128xf32, #tpu.memory_space<vmem>>, %arg2: memref<1xf32, #tpu.memory_space<smem>>, %arg3: memref<25002x128xf32, #tpu.memory_space<any>>, %arg4: memref<2x1xf32, #tpu.memory_space<vmem>>, %arg5: memref<16x128xf32, #tpu.memory_space<vmem>>, %arg6: memref<!tpu.dma_semaphore, #tpu.memory_space<semaphore_mem>>) attributes {dimension_semantics = [], scalar_prefetch = 0 : i64, scratch_operands = 2 : i64, tpu.core_type = #tpu.core_type<tc>} {
    %c0 = arith.constant 0 : index
    %c0_0 = arith.constant 0 : index
    %0 = memref.load %arg0[%c0, %c0_0] : memref<2x8xi32, #tpu.memory_space<smem>>
    %c0_i32 = arith.constant 0 : i32
    %1 = arith.maxsi %0, %c0_i32 : i32
    %c25001_i32 = arith.constant 25001 : i32
    %2 = arith.minsi %1, %c25001_i32 : i32
    %c0_i32_1 = arith.constant 0 : i32
    %3 = tpu.memref_slice %arg3[%2, %c0_i32_1] : memref<25002x128xf32, #tpu.memory_space<any>> -> memref<1x128xf32, #tpu.memory_space<any>>
    %c0_i32_2 = arith.constant 0 : i32
    %c0_i32_3 = arith.constant 0 : i32
    %4 = tpu.memref_slice %arg5[%c0_i32_2, %c0_i32_3] : memref<16x128xf32, #tpu.memory_space<vmem>> -> memref<1x128xf32, #tpu.memory_space<vmem>>
    tpu.enqueue_dma source(%3 : memref<1x128xf32, #tpu.memory_space<any>>) target(%4 : memref<1x128xf32, #tpu.memory_space<vmem>>) target_semaphore(%arg6 : memref<!tpu.dma_semaphore, #tpu.memory_space<semaphore_mem>>)
    %c0_4 = arith.constant 0 : index
    %c1 = arith.constant 1 : index
    %5 = memref.load %arg0[%c0_4, %c1] : memref<2x8xi32, #tpu.memory_space<smem>>
    %c0_i32_5 = arith.constant 0 : i32
    %6 = arith.maxsi %5, %c0_i32_5 : i32
    %c25001_i32_6 = arith.constant 25001 : i32
    %7 = arith.minsi %6, %c25001_i32_6 : i32
    %c0_i32_7 = arith.constant 0 : i32
    %8 = tpu.memref_slice %arg3[%7, %c0_i32_7] : memref<25002x128xf32, #tpu.memory_space<any>> -> memref<1x128xf32, #tpu.memory_space<any>>
    %c1_i32 = arith.constant 1 : i32
    %c0_i32_8 = arith.constant 0 : i32
    %9 = tpu.memref_slice %arg5[%c1_i32, %c0_i32_8] : memref<16x128xf32, #tpu.memory_space<vmem>> -> memref<1x128xf32, #tpu.memory_space<vmem>>
    tpu.enqueue_dma source(%8 : memref<1x128xf32, #tpu.memory_space<any>>) target(%9 : memref<1x128xf32, #tpu.memory_space<vmem>>) target_semaphore(%arg6 : memref<!tpu.dma_semaphore, #tpu.memory_space<semaphore_mem>>)
    %c0_9 = arith.constant 0 : index
    %c2 = arith.constant 2 : index
    %10 = memref.load %arg0[%c0_9, %c2] : memref<2x8xi32, #tpu.memory_space<smem>>
    %c0_i32_10 = arith.constant 0 : i32
    %11 = arith.maxsi %10, %c0_i32_10 : i32
    %c25001_i32_11 = arith.constant 25001 : i32
    %12 = arith.minsi %11, %c25001_i32_11 : i32
    %c0_i32_12 = arith.constant 0 : i32
    %13 = tpu.memref_slice %arg3[%12, %c0_i32_12] : memref<25002x128xf32, #tpu.memory_space<any>> -> memref<1x128xf32, #tpu.memory_space<any>>
    %c2_i32 = arith.constant 2 : i32
    %c0_i32_13 = arith.constant 0 : i32
    %14 = tpu.memref_slice %arg5[%c2_i32, %c0_i32_13] : memref<16x128xf32, #tpu.memory_space<vmem>> -> memref<1x128xf32, #tpu.memory_space<vmem>>
    tpu.enqueue_dma source(%13 : memref<1x128xf32, #tpu.memory_space<any>>) target(%14 : memref<1x128xf32, #tpu.memory_space<vmem>>) target_semaphore(%arg6 : memref<!tpu.dma_semaphore, #tpu.memory_space<semaphore_mem>>)
    %c0_14 = arith.constant 0 : index
    %c3 = arith.constant 3 : index
    %15 = memref.load %arg0[%c0_14, %c3] : memref<2x8xi32, #tpu.memory_space<smem>>
    %c0_i32_15 = arith.constant 0 : i32
    %16 = arith.maxsi %15, %c0_i32_15 : i32
    %c25001_i32_16 = arith.constant 25001 : i32
    %17 = arith.minsi %16, %c25001_i32_16 : i32
    %c0_i32_17 = arith.constant 0 : i32
    %18 = tpu.memref_slice %arg3[%17, %c0_i32_17] : memref<25002x128xf32, #tpu.memory_space<any>> -> memref<1x128xf32, #tpu.memory_space<any>>
    %c3_i32 = arith.constant 3 : i32
    %c0_i32_18 = arith.constant 0 : i32
    %19 = tpu.memref_slice %arg5[%c3_i32, %c0_i32_18] : memref<16x128xf32, #tpu.memory_space<vmem>> -> memref<1x128xf32, #tpu.memory_space<vmem>>
    tpu.enqueue_dma source(%18 : memref<1x128xf32, #tpu.memory_space<any>>) target(%19 : memref<1x128xf32, #tpu.memory_space<vmem>>) target_semaphore(%arg6 : memref<!tpu.dma_semaphore, #tpu.memory_space<semaphore_mem>>)
    %c0_19 = arith.constant 0 : index
    %c4 = arith.constant 4 : index
    %20 = memref.load %arg0[%c0_19, %c4] : memref<2x8xi32, #tpu.memory_space<smem>>
    %c0_i32_20 = arith.constant 0 : i32
    %21 = arith.maxsi %20, %c0_i32_20 : i32
    %c25001_i32_21 = arith.constant 25001 : i32
    %22 = arith.minsi %21, %c25001_i32_21 : i32
    %c0_i32_22 = arith.constant 0 : i32
    %23 = tpu.memref_slice %arg3[%22, %c0_i32_22] : memref<25002x128xf32, #tpu.memory_space<any>> -> memref<1x128xf32, #tpu.memory_space<any>>
    %c4_i32 = arith.constant 4 : i32
    %c0_i32_23 = arith.constant 0 : i32
    %24 = tpu.memref_slice %arg5[%c4_i32, %c0_i32_23] : memref<16x128xf32, #tpu.memory_space<vmem>> -> memref<1x128xf32, #tpu.memory_space<vmem>>
    tpu.enqueue_dma source(%23 : memref<1x128xf32, #tpu.memory_space<any>>) target(%24 : memref<1x128xf32, #tpu.memory_space<vmem>>) target_semaphore(%arg6 : memref<!tpu.dma_semaphore, #tpu.memory_space<semaphore_mem>>)
    %c0_24 = arith.constant 0 : index
    %c5 = arith.constant 5 : index
    %25 = memref.load %arg0[%c0_24, %c5] : memref<2x8xi32, #tpu.memory_space<smem>>
    %c0_i32_25 = arith.constant 0 : i32
    %26 = arith.maxsi %25, %c0_i32_25 : i32
    %c25001_i32_26 = arith.constant 25001 : i32
    %27 = arith.minsi %26, %c25001_i32_26 : i32
    %c0_i32_27 = arith.constant 0 : i32
    %28 = tpu.memref_slice %arg3[%27, %c0_i32_27] : memref<25002x128xf32, #tpu.memory_space<any>> -> memref<1x128xf32, #tpu.memory_space<any>>
    %c5_i32 = arith.constant 5 : i32
    %c0_i32_28 = arith.constant 0 : i32
    %29 = tpu.memref_slice %arg5[%c5_i32, %c0_i32_28] : memref<16x128xf32, #tpu.memory_space<vmem>> -> memref<1x128xf32, #tpu.memory_space<vmem>>
    tpu.enqueue_dma source(%28 : memref<1x128xf32, #tpu.memory_space<any>>) target(%29 : memref<1x128xf32, #tpu.memory_space<vmem>>) target_semaphore(%arg6 : memref<!tpu.dma_semaphore, #tpu.memory_space<semaphore_mem>>)
    %c0_29 = arith.constant 0 : index
    %c6 = arith.constant 6 : index
    %30 = memref.load %arg0[%c0_29, %c6] : memref<2x8xi32, #tpu.memory_space<smem>>
    %c0_i32_30 = arith.constant 0 : i32
    %31 = arith.maxsi %30, %c0_i32_30 : i32
    %c25001_i32_31 = arith.constant 25001 : i32
    %32 = arith.minsi %31, %c25001_i32_31 : i32
    %c0_i32_32 = arith.constant 0 : i32
    %33 = tpu.memref_slice %arg3[%32, %c0_i32_32] : memref<25002x128xf32, #tpu.memory_space<any>> -> memref<1x128xf32, #tpu.memory_space<any>>
    %c6_i32 = arith.constant 6 : i32
    %c0_i32_33 = arith.constant 0 : i32
    %34 = tpu.memref_slice %arg5[%c6_i32, %c0_i32_33] : memref<16x128xf32, #tpu.memory_space<vmem>> -> memref<1x128xf32, #tpu.memory_space<vmem>>
    tpu.enqueue_dma source(%33 : memref<1x128xf32, #tpu.memory_space<any>>) target(%34 : memref<1x128xf32, #tpu.memory_space<vmem>>) target_semaphore(%arg6 : memref<!tpu.dma_semaphore, #tpu.memory_space<semaphore_mem>>)
    %c0_34 = arith.constant 0 : index
    %c7 = arith.constant 7 : index
    %35 = memref.load %arg0[%c0_34, %c7] : memref<2x8xi32, #tpu.memory_space<smem>>
    %c0_i32_35 = arith.constant 0 : i32
    %36 = arith.maxsi %35, %c0_i32_35 : i32
    %c25001_i32_36 = arith.constant 25001 : i32
    %37 = arith.minsi %36, %c25001_i32_36 : i32
    %c0_i32_37 = arith.constant 0 : i32
    %38 = tpu.memref_slice %arg3[%37, %c0_i32_37] : memref<25002x128xf32, #tpu.memory_space<any>> -> memref<1x128xf32, #tpu.memory_space<any>>
    %c7_i32 = arith.constant 7 : i32
    %c0_i32_38 = arith.constant 0 : i32
    %39 = tpu.memref_slice %arg5[%c7_i32, %c0_i32_38] : memref<16x128xf32, #tpu.memory_space<vmem>> -> memref<1x128xf32, #tpu.memory_space<vmem>>
    tpu.enqueue_dma source(%38 : memref<1x128xf32, #tpu.memory_space<any>>) target(%39 : memref<1x128xf32, #tpu.memory_space<vmem>>) target_semaphore(%arg6 : memref<!tpu.dma_semaphore, #tpu.memory_space<semaphore_mem>>)
    %c1_39 = arith.constant 1 : index
    %c0_40 = arith.constant 0 : index
    %40 = memref.load %arg0[%c1_39, %c0_40] : memref<2x8xi32, #tpu.memory_space<smem>>
    %c0_i32_41 = arith.constant 0 : i32
    %41 = arith.maxsi %40, %c0_i32_41 : i32
    %c25001_i32_42 = arith.constant 25001 : i32
    %42 = arith.minsi %41, %c25001_i32_42 : i32
    %c0_i32_43 = arith.constant 0 : i32
    %43 = tpu.memref_slice %arg3[%42, %c0_i32_43] : memref<25002x128xf32, #tpu.memory_space<any>> -> memref<1x128xf32, #tpu.memory_space<any>>
    %c8_i32 = arith.constant 8 : i32
    %c0_i32_44 = arith.constant 0 : i32
    %44 = tpu.memref_slice %arg5[%c8_i32, %c0_i32_44] : memref<16x128xf32, #tpu.memory_space<vmem>> -> memref<1x128xf32, #tpu.memory_space<vmem>>
    tpu.enqueue_dma source(%43 : memref<1x128xf32, #tpu.memory_space<any>>) target(%44 : memref<1x128xf32, #tpu.memory_space<vmem>>) target_semaphore(%arg6 : memref<!tpu.dma_semaphore, #tpu.memory_space<semaphore_mem>>)
    %c1_45 = arith.constant 1 : index
    %c1_46 = arith.constant 1 : index
    %45 = memref.load %arg0[%c1_45, %c1_46] : memref<2x8xi32, #tpu.memory_space<smem>>
    %c0_i32_47 = arith.constant 0 : i32
    %46 = arith.maxsi %45, %c0_i32_47 : i32
    %c25001_i32_48 = arith.constant 25001 : i32
    %47 = arith.minsi %46, %c25001_i32_48 : i32
    %c0_i32_49 = arith.constant 0 : i32
    %48 = tpu.memref_slice %arg3[%47, %c0_i32_49] : memref<25002x128xf32, #tpu.memory_space<any>> -> memref<1x128xf32, #tpu.memory_space<any>>
    %c9_i32 = arith.constant 9 : i32
    %c0_i32_50 = arith.constant 0 : i32
    %49 = tpu.memref_slice %arg5[%c9_i32, %c0_i32_50] : memref<16x128xf32, #tpu.memory_space<vmem>> -> memref<1x128xf32, #tpu.memory_space<vmem>>
    tpu.enqueue_dma source(%48 : memref<1x128xf32, #tpu.memory_space<any>>) target(%49 : memref<1x128xf32, #tpu.memory_space<vmem>>) target_semaphore(%arg6 : memref<!tpu.dma_semaphore, #tpu.memory_space<semaphore_mem>>)
    %c1_51 = arith.constant 1 : index
    %c2_52 = arith.constant 2 : index
    %50 = memref.load %arg0[%c1_51, %c2_52] : memref<2x8xi32, #tpu.memory_space<smem>>
    %c0_i32_53 = arith.constant 0 : i32
    %51 = arith.maxsi %50, %c0_i32_53 : i32
    %c25001_i32_54 = arith.constant 25001 : i32
    %52 = arith.minsi %51, %c25001_i32_54 : i32
    %c0_i32_55 = arith.constant 0 : i32
    %53 = tpu.memref_slice %arg3[%52, %c0_i32_55] : memref<25002x128xf32, #tpu.memory_space<any>> -> memref<1x128xf32, #tpu.memory_space<any>>
    %c10_i32 = arith.constant 10 : i32
    %c0_i32_56 = arith.constant 0 : i32
    %54 = tpu.memref_slice %arg5[%c10_i32, %c0_i32_56] : memref<16x128xf32, #tpu.memory_space<vmem>> -> memref<1x128xf32, #tpu.memory_space<vmem>>
    tpu.enqueue_dma source(%53 : memref<1x128xf32, #tpu.memory_space<any>>) target(%54 : memref<1x128xf32, #tpu.memory_space<vmem>>) target_semaphore(%arg6 : memref<!tpu.dma_semaphore, #tpu.memory_space<semaphore_mem>>)
    %c1_57 = arith.constant 1 : index
    %c3_58 = arith.constant 3 : index
    %55 = memref.load %arg0[%c1_57, %c3_58] : memref<2x8xi32, #tpu.memory_space<smem>>
    %c0_i32_59 = arith.constant 0 : i32
    %56 = arith.maxsi %55, %c0_i32_59 : i32
    %c25001_i32_60 = arith.constant 25001 : i32
    %57 = arith.minsi %56, %c25001_i32_60 : i32
    %c0_i32_61 = arith.constant 0 : i32
    %58 = tpu.memref_slice %arg3[%57, %c0_i32_61] : memref<25002x128xf32, #tpu.memory_space<any>> -> memref<1x128xf32, #tpu.memory_space<any>>
    %c11_i32 = arith.constant 11 : i32
    %c0_i32_62 = arith.constant 0 : i32
    %59 = tpu.memref_slice %arg5[%c11_i32, %c0_i32_62] : memref<16x128xf32, #tpu.memory_space<vmem>> -> memref<1x128xf32, #tpu.memory_space<vmem>>
    tpu.enqueue_dma source(%58 : memref<1x128xf32, #tpu.memory_space<any>>) target(%59 : memref<1x128xf32, #tpu.memory_space<vmem>>) target_semaphore(%arg6 : memref<!tpu.dma_semaphore, #tpu.memory_space<semaphore_mem>>)
    %c1_63 = arith.constant 1 : index
    %c4_64 = arith.constant 4 : index
    %60 = memref.load %arg0[%c1_63, %c4_64] : memref<2x8xi32, #tpu.memory_space<smem>>
    %c0_i32_65 = arith.constant 0 : i32
    %61 = arith.maxsi %60, %c0_i32_65 : i32
    %c25001_i32_66 = arith.constant 25001 : i32
    %62 = arith.minsi %61, %c25001_i32_66 : i32
    %c0_i32_67 = arith.constant 0 : i32
    %63 = tpu.memref_slice %arg3[%62, %c0_i32_67] : memref<25002x128xf32, #tpu.memory_space<any>> -> memref<1x128xf32, #tpu.memory_space<any>>
    %c12_i32 = arith.constant 12 : i32
    %c0_i32_68 = arith.constant 0 : i32
    %64 = tpu.memref_slice %arg5[%c12_i32, %c0_i32_68] : memref<16x128xf32, #tpu.memory_space<vmem>> -> memref<1x128xf32, #tpu.memory_space<vmem>>
    tpu.enqueue_dma source(%63 : memref<1x128xf32, #tpu.memory_space<any>>) target(%64 : memref<1x128xf32, #tpu.memory_space<vmem>>) target_semaphore(%arg6 : memref<!tpu.dma_semaphore, #tpu.memory_space<semaphore_mem>>)
    %c1_69 = arith.constant 1 : index
    %c5_70 = arith.constant 5 : index
    %65 = memref.load %arg0[%c1_69, %c5_70] : memref<2x8xi32, #tpu.memory_space<smem>>
    %c0_i32_71 = arith.constant 0 : i32
    %66 = arith.maxsi %65, %c0_i32_71 : i32
    %c25001_i32_72 = arith.constant 25001 : i32
    %67 = arith.minsi %66, %c25001_i32_72 : i32
    %c0_i32_73 = arith.constant 0 : i32
    %68 = tpu.memref_slice %arg3[%67, %c0_i32_73] : memref<25002x128xf32, #tpu.memory_space<any>> -> memref<1x128xf32, #tpu.memory_space<any>>
    %c13_i32 = arith.constant 13 : i32
    %c0_i32_74 = arith.constant 0 : i32
    %69 = tpu.memref_slice %arg5[%c13_i32, %c0_i32_74] : memref<16x128xf32, #tpu.memory_space<vmem>> -> memref<1x128xf32, #tpu.memory_space<vmem>>
    tpu.enqueue_dma source(%68 : memref<1x128xf32, #tpu.memory_space<any>>) target(%69 : memref<1x128xf32, #tpu.memory_space<vmem>>) target_semaphore(%arg6 : memref<!tpu.dma_semaphore, #tpu.memory_space<semaphore_mem>>)
    %c1_75 = arith.constant 1 : index
    %c6_76 = arith.constant 6 : index
    %70 = memref.load %arg0[%c1_75, %c6_76] : memref<2x8xi32, #tpu.memory_space<smem>>
    %c0_i32_77 = arith.constant 0 : i32
    %71 = arith.maxsi %70, %c0_i32_77 : i32
    %c25001_i32_78 = arith.constant 25001 : i32
    %72 = arith.minsi %71, %c25001_i32_78 : i32
    %c0_i32_79 = arith.constant 0 : i32
    %73 = tpu.memref_slice %arg3[%72, %c0_i32_79] : memref<25002x128xf32, #tpu.memory_space<any>> -> memref<1x128xf32, #tpu.memory_space<any>>
    %c14_i32 = arith.constant 14 : i32
    %c0_i32_80 = arith.constant 0 : i32
    %74 = tpu.memref_slice %arg5[%c14_i32, %c0_i32_80] : memref<16x128xf32, #tpu.memory_space<vmem>> -> memref<1x128xf32, #tpu.memory_space<vmem>>
    tpu.enqueue_dma source(%73 : memref<1x128xf32, #tpu.memory_space<any>>) target(%74 : memref<1x128xf32, #tpu.memory_space<vmem>>) target_semaphore(%arg6 : memref<!tpu.dma_semaphore, #tpu.memory_space<semaphore_mem>>)
    %c1_81 = arith.constant 1 : index
    %c7_82 = arith.constant 7 : index
    %75 = memref.load %arg0[%c1_81, %c7_82] : memref<2x8xi32, #tpu.memory_space<smem>>
    %c0_i32_83 = arith.constant 0 : i32
    %76 = arith.maxsi %75, %c0_i32_83 : i32
    %c25001_i32_84 = arith.constant 25001 : i32
    %77 = arith.minsi %76, %c25001_i32_84 : i32
    %c0_i32_85 = arith.constant 0 : i32
    %78 = tpu.memref_slice %arg3[%77, %c0_i32_85] : memref<25002x128xf32, #tpu.memory_space<any>> -> memref<1x128xf32, #tpu.memory_space<any>>
    %c15_i32 = arith.constant 15 : i32
    %c0_i32_86 = arith.constant 0 : i32
    %79 = tpu.memref_slice %arg5[%c15_i32, %c0_i32_86] : memref<16x128xf32, #tpu.memory_space<vmem>> -> memref<1x128xf32, #tpu.memory_space<vmem>>
    tpu.enqueue_dma source(%78 : memref<1x128xf32, #tpu.memory_space<any>>) target(%79 : memref<1x128xf32, #tpu.memory_space<vmem>>) target_semaphore(%arg6 : memref<!tpu.dma_semaphore, #tpu.memory_space<semaphore_mem>>)
    %c0_87 = arith.constant 0 : index
    %80 = memref.load %arg2[%c0_87] : memref<1xf32, #tpu.memory_space<smem>>
    %c0_i32_88 = arith.constant 0 : i32
    %c0_i32_89 = arith.constant 0 : i32
    %81 = tpu.memref_slice %arg3[%c0_i32_88, %c0_i32_89] : memref<25002x128xf32, #tpu.memory_space<any>> -> memref<16x128xf32, #tpu.memory_space<any>>
    %c0_i32_90 = arith.constant 0 : i32
    %c0_i32_91 = arith.constant 0 : i32
    %82 = tpu.memref_slice %arg5[%c0_i32_90, %c0_i32_91] : memref<16x128xf32, #tpu.memory_space<vmem>> -> memref<16x128xf32, #tpu.memory_space<vmem>>
    tpu.wait_dma2 semaphore(%arg6 : memref<!tpu.dma_semaphore, #tpu.memory_space<semaphore_mem>>) src(%81 : memref<16x128xf32, #tpu.memory_space<any>>) dst(%82 : memref<16x128xf32, #tpu.memory_space<vmem>>)
    %c0_92 = arith.constant 0 : index
    %c0_93 = arith.constant 0 : index
    %83 = vector.load %arg5[%c0_92, %c0_93] : memref<16x128xf32, #tpu.memory_space<vmem>>, vector<16x128xf32>
    %84 = vector.shape_cast %83 : vector<16x128xf32> to vector<2x8x128xf32>
    %cst = arith.constant dense<0.000000e+00> : vector<2x128xf32>
    %85 = vector.multi_reduction <add>, %84, %cst [1] : vector<2x8x128xf32> to vector<2x128xf32>
    %cst_94 = arith.constant 1.250000e-01 : f32
    %86 = vector.broadcast %cst_94 : f32 to vector<2x128xf32>
    %87 = arith.mulf %85, %86 : vector<2x128xf32>
    %c0_95 = arith.constant 0 : index
    %c0_96 = arith.constant 0 : index
    %88 = vector.load %arg1[%c0_95, %c0_96] : memref<1x128xf32, #tpu.memory_space<vmem>>, vector<1x128xf32>
    %89 = vector.broadcast %88 : vector<1x128xf32> to vector<2x128xf32>
    %90 = arith.mulf %87, %89 : vector<2x128xf32>
    %cst_97 = arith.constant dense<0.000000e+00> : vector<2xf32>
    %91 = vector.multi_reduction <add>, %90, %cst_97 [1] : vector<2x128xf32> to vector<2xf32>
    %92 = vector.shape_cast %91 : vector<2xf32> to vector<2x1xf32>
    %93 = vector.broadcast %80 : f32 to vector<2x1xf32>
    %94 = arith.addf %92, %93 : vector<2x1xf32>
    %c0_98 = arith.constant 0 : index
    %c0_99 = arith.constant 0 : index
    %95 = vector.load %arg4[%c0_98, %c0_99] : memref<2x1xf32, #tpu.memory_space<vmem>>, vector<2x1xf32>
    tpu.vector_store %arg4[%c0_98, %c0_99], %94 {strides = array<i32>} : memref<2x1xf32, #tpu.memory_space<vmem>>, vector<2x1xf32>,
    return
  }
}

</mosaic_0001>

<bundles_post_ra>
// kernel: tpu_custom_call.1
= control target key start
LH: loop header
LB: loop body
LE: loop exit
PB: predicated region body
PF: predicated region fallthrough
CT: control target
= control target key end

     0   :  { %10 = vsyncpa [#allocation7], 0  ;;  %s1413_s0 = inlined_call_operand.hbm [shape: s32[2,8], index: 0, kind: input, shape index: {}]   ;;  %s1414_s1 = inlined_call_operand.hbm [shape: f32[1,128], index: 1, kind: input, shape index: {}]   ;;  %s1415_s2 = inlined_call_operand.<no memory space> [shape: f32[1], index: 2, kind: input, shape index: {}]   ;;  %s1416_s3 = inlined_call_operand.hbm [shape: f32[25002,128], index: 3, kind: input, shape index: {}]   ;;  %s1417_s4 = inlined_call_operand.vmem [shape: f32[2,1], index: 4, kind: output, shape index: {}]  }
   0x1   :  { %11 = vsyncpa [#allocation6], 0  ;;  %s592_s17 = scalar_lea.hbm %s1413_s0, 32 }
   0x2   :  { %p593_p0 = scmp.ne.s32.totalorder %s1413_s0, %s592_s17  ;;  %p596_p1 = scmp.lt.u32.totalorder %s592_s17, %s1413_s0 }
   0x4   :  { %p598_p2 = pnand %p596_p1, %p593_p0 }
   0x6   :  { %601 = shalt.err (!%p598_p2)
}
   0x7   :  { %s1014_s22 = smov [#allocation5]   ;;  %s1015_s25 = smov [#allocation8]  }
   0x8   :  { %19 = dma.hbm_to_smem %s1413_s0, 32, %s1014_s22, [#allocation7]  }
   0x9   :  { %s26_s26 = sshll.u32 %s1015_s25, 4  ;;  %s602_s29 = scalar_lea.hbm %s1414_s1, 16  ;;  %s27_s26 = int_to_ptr.vmem [resolvable:$true] %s26_s26 }
   0xa   :  { %p603_p3 = scmp.ne.s32.totalorder %s1414_s1, %s602_s29  ;;  %p606_p4 = scmp.lt.u32.totalorder %s602_s29, %s1414_s1 }
   0xc   :  { %p608_p5 = pnand %p606_p4, %p603_p3 }
   0xe   :  { %611 = shalt.err (!%p608_p5)
}
   0xf   :  { %s612_s8 = scalar_lea.vmem %s27_s26, 16  ;;  %s616_s0 = scalar_lea.vmem %s27_s26, 32 }
  0x10   :  { %p613_p6 = scmp.ne.s32.totalorder %s27_s26, %s612_s8  ;;  %p617_p7 = scmp.lt.s32.totalorder %s27_s26, %s27_s26 }
  0x11   :  { %p618_p8 = scmp.lt.s32.totalorder %s616_s0, %s612_s8 }
  0x13   :  { %p619_p9 = por %p618_p8, %p617_p7 }
  0x15   :  { %p620_p10 = pnand %p619_p9, %p613_p6 }
  0x17   :  { %623 = shalt.err (!%p620_p10)
}
  0x18   :  { %29 = dma.hbm_to_vmem [thread:$0]  %s1414_s1, 16, %s27_s26, [#allocation6]  }
  0x19   :  { %1008 = dma.done.wait [#allocation7], 32  }
  0x1a   :  { %1009 = vsyncadd [#allocation7], 4294967264 }
  0x1b   :  { %1010 = dma.done.wait [#allocation6], 16  }
  0x1c   :  { %1011 = vsyncadd [#allocation6], 4294967280 }
  0x1d   :  { %38 = sfence }
  0x1e   :  { %s39_s11 = sld [smem:[#allocation5]]  ;;  %s1016_s12 = smov [#allocation2]  }
  0x1f   :  { %s53_s13 = sshll.u32 %s1016_s12, 4  ;;  %s435_s14 = sld [smem:[#allocation5 + $0x1]]  ;;  %s1081_s13 = int_to_ptr.vmem [resolvable:$true] %s53_s13 }
  0x20   :  { %s1017_s15 = smov [#allocation2 + $0x1]   ;;  %s1083_s17 = sld [smem:[#allocation5 + $0x2]] }
  0x21   :  { %s72_s16 = sshll.u32 %s1017_s15, 4  ;;  %s1018_s18 = smov [#allocation2 + $0x2]   ;;  %s1085_s16 = int_to_ptr.vmem [resolvable:$true] %s72_s16 }
  0x22   :  { %s1087_s1 = sshll.u32 %s1018_s18, 4  ;;  %s1089_s19 = sld [smem:[#allocation5 + $0x3]]  ;;  %s92_s1 = int_to_ptr.vmem [resolvable:$true] %s1087_s1 }
  0x23   :  { %s1098_s28 = scalar_lea.hbm %s1416_s3, 400128 }
  0x24   :  { %p40_p11 = scmp.gt.s32.totalorder %s39_s11, 0  ;;  %p429_p12 = scmp.lt.s32.totalorder %s39_s11, 25001 }
  0x25   :  { %p58_p13 = scmp.gt.s32.totalorder %s435_s14, 0  ;;  %p436_p0 = scmp.lt.s32.totalorder %s435_s14, 25001 }
  0x26   :  { %s1422_s11 = smov (!%p40_p11, %s39_s11), 0  ;;  %p77_p1 = scmp.gt.s32.totalorder %s1083_s17, 0 }
  0x27   :  { %s1424_s14 = smov (!%p58_p13, %s435_s14), 0  ;;  %s1426_s11 = smov (!%p429_p12, %s1422_s11), 25001 }
  0x28   :  { %s1428_s14 = smov (!%p436_p0, %s1424_s14), 25001  ;;  %s434_s20 = sshll.u32 %s1426_s11, 4 }
  0x29   :  { %s45_s23 = scalar_lea.hbm %s1416_s3, %s434_s20  ;;  %s441_s24 = sshll.u32 %s1428_s14, 4 }
  0x2a   :  { %s624_s25 = scalar_lea.hbm %s45_s23, 16  ;;  %p627_p3 = scmp.lt.u32.totalorder %s45_s23, %s1416_s3 }
  0x2b   :  { %p625_p2 = scmp.ne.s32.totalorder %s45_s23, %s624_s25  ;;  %p628_p4 = scmp.lt.u32.totalorder %s1098_s28, %s624_s25 }
  0x2c   :  { %p630_p6 = scmp.lt.u32.totalorder %s624_s25, %s45_s23 }
  0x2d   :  { %p629_p5 = por %p628_p4, %p627_p3 }
  0x2f   :  { %p631_p7 = por %p630_p6, %p629_p5 }
  0x31   :  { %p632_p8 = pnand %p631_p7, %p625_p2 }
  0x33   :  { %635 = shalt.err (!%p632_p8)  }
  0x34   :  { %s636_s5 = scalar_lea.vmem %s1081_s13, 16  ;;  %s1107_s6 = scalar_lea.vmem %s1081_s13, 256 }
  0x35   :  { %p637_p9 = scmp.ne.s32.totalorder %s1081_s13, %s636_s5  ;;  %p641_p10 = scmp.lt.s32.totalorder %s1081_s13, %s1081_s13 }
  0x36   :  { %p642_p11 = scmp.lt.s32.totalorder %s1107_s6, %s636_s5 }
  0x38   :  { %p643_p12 = por %p642_p11, %p641_p10 }
  0x3a   :  { %p644_p13 = pnand %p643_p12, %p637_p9 }
  0x3c   :  { %647 = shalt.err (!%p644_p13)  }
  0x3d   :  { %56 = dma.hbm_to_vmem [thread:$0]  %s45_s23, 16, %s1081_s13, [#allocation3] }
  0x3e   :  { %s63_s0 = scalar_lea.hbm %s1416_s3, %s441_s24  ;;  %p443_p0 = scmp.lt.s32.totalorder %s1083_s17, 25001 }
  0x3f   :  { %s648_s9 = scalar_lea.hbm %s63_s0, 16  ;;  %p651_p3 = scmp.lt.u32.totalorder %s63_s0, %s1416_s3 }
  0x40   :  { %p649_p2 = scmp.ne.s32.totalorder %s63_s0, %s648_s9  ;;  %p652_p4 = scmp.lt.u32.totalorder %s1098_s28, %s648_s9 }
  0x41   :  { %p654_p6 = scmp.lt.u32.totalorder %s648_s9, %s63_s0 }
  0x42   :  { %p653_p5 = por %p652_p4, %p651_p3 }
  0x44   :  { %p655_p7 = por %p654_p6, %p653_p5 }
  0x46   :  { %p656_p8 = pnand %p655_p7, %p649_p2 }
  0x48   :  { %659 = shalt.err (!%p656_p8)  }
  0x49   :  { %s660_s12 = scalar_lea.vmem %s1085_s16, 16  ;;  %p665_p10 = scmp.lt.s32.totalorder %s1085_s16, %s1081_s13 }
  0x4a   :  { %p661_p9 = scmp.ne.s32.totalorder %s1085_s16, %s660_s12  ;;  %p666_p11 = scmp.lt.s32.totalorder %s1107_s6, %s660_s12 }
  0x4c   :  { %p667_p12 = por %p666_p11, %p665_p10 }
  0x4e   :  { %p668_p13 = pnand %p667_p12, %p661_p9 }
  0x50   :  { %671 = shalt.err (!%p668_p13)  }
  0x51   :  { %75 = dma.hbm_to_vmem [thread:$0]  %s63_s0, 16, %s1085_s16, [#allocation3] }
  0x52   :  { %s78_s14 = scalar_select %p77_p1, %s1083_s17, 0 }
  0x53   :  { %p96_p2 = scmp.gt.s32.totalorder %s1089_s19, 0  ;;  %p450_p3 = scmp.lt.s32.totalorder %s1089_s19, 25001 }
  0x54   :  { %s1430_s14 = smov (!%p443_p0, %s78_s14), 25001 }
  0x55   :  { %s97_s15 = scalar_select %p96_p2, %s1089_s19, 0 }
  0x56   :  { %s448_s18 = sshll.u32 %s1430_s14, 4 }
  0x57   :  { %s82_s22 = scalar_lea.hbm %s1416_s3, %s448_s18 }
  0x58   :  { %s672_s23 = scalar_lea.hbm %s82_s22, 16  ;;  %p675_p5 = scmp.lt.u32.totalorder %s82_s22, %s1416_s3 }
  0x59   :  { %p673_p4 = scmp.ne.s32.totalorder %s82_s22, %s672_s23  ;;  %p676_p6 = scmp.lt.u32.totalorder %s1098_s28, %s672_s23 }
  0x5a   :  { %p678_p1 = scmp.lt.u32.totalorder %s672_s23, %s82_s22 }
  0x5b   :  { %p677_p7 = por %p676_p6, %p675_p5 }
  0x5d   :  { %p679_p8 = por %p678_p1, %p677_p7 }
  0x5f   :  { %p680_p9 = pnand %p679_p8, %p673_p4 }
  0x61   :  { %683 = shalt.err (!%p680_p9)  }
  0x62   :  { %s684_s16 = scalar_lea.vmem %s92_s1, 16  ;;  %p689_p10 = scmp.lt.s32.totalorder %s92_s1, %s1081_s13 }
  0x63   :  { %p685_p0 = scmp.ne.s32.totalorder %s92_s1, %s684_s16  ;;  %p690_p11 = scmp.lt.s32.totalorder %s1107_s6, %s684_s16 }
  0x65   :  { %p691_p12 = por %p690_p11, %p689_p10 }
  0x67   :  { %p692_p13 = pnand %p691_p12, %p685_p0 }
  0x69   :  { %695 = shalt.err (!%p692_p13)  }
  0x6a   :  { %94 = dma.hbm_to_vmem [thread:$0]  %s82_s22, 16, %s92_s1, [#allocation3] }
  0x6b   :  { %s1432_s15 = smov (!%p450_p3, %s97_s15), 25001  ;;  %s1019_s17 = smov [#allocation2 + $0x3]  }
  0x6c   :  { %s110_s26 = sshll.u32 %s1019_s17, 4  ;;  %s1147_s27 = sld [smem:[#allocation5 + $0x4]]  ;;  %s111_s26 = int_to_ptr.vmem [resolvable:$true] %s110_s26 }
  0x6d   :  { %s455_s29 = sshll.u32 %s1432_s15, 4 }
  0x6e   :  { %s101_s7 = scalar_lea.hbm %s1416_s3, %s455_s29 }
  0x6f   :  { %s696_s8 = scalar_lea.hbm %s101_s7, 16  ;;  %p699_p4 = scmp.lt.u32.totalorder %s101_s7, %s1416_s3 }
  0x70   :  { %p697_p2 = scmp.ne.s32.totalorder %s101_s7, %s696_s8  ;;  %p700_p5 = scmp.lt.u32.totalorder %s1098_s28, %s696_s8 }
  0x71   :  { %p702_p7 = scmp.lt.u32.totalorder %s696_s8, %s101_s7 }
  0x72   :  { %p701_p6 = por %p700_p5, %p699_p4 }
  0x74   :  { %p703_p3 = por %p702_p7, %p701_p6 }
  0x76   :  { %p704_p1 = pnand %p703_p3, %p697_p2 }
  0x78   :  { %707 = shalt.err (!%p704_p1)  }
  0x79   :  { %s708_s1 = scalar_lea.vmem %s111_s26, 16  ;;  %p713_p9 = scmp.lt.s32.totalorder %s111_s26, %s1081_s13 }
  0x7a   :  { %p709_p8 = scmp.ne.s32.totalorder %s111_s26, %s708_s1  ;;  %p714_p0 = scmp.lt.s32.totalorder %s1107_s6, %s708_s1 }
  0x7c   :  { %p715_p10 = por %p714_p0, %p713_p9 }
  0x7e   :  { %p716_p11 = pnand %p715_p10, %p709_p8 }
  0x80   :  { %719 = shalt.err (!%p716_p11)  }
  0x81   :  { %113 = dma.hbm_to_vmem [thread:$0]  %s101_s7, 16, %s111_s26, [#allocation3] }
  0x82   :  { %s1020_s19 = smov [#allocation2 + $0x4]   ;;  %s1158_s11 = sld [smem:[#allocation5 + $0x5]] }
  0x83   :  { %s129_s10 = sshll.u32 %s1020_s19, 4  ;;  %p115_p12 = scmp.gt.s32.totalorder %s1147_s27, 0  ;;  %s1160_s10 = int_to_ptr.vmem [resolvable:$true] %s129_s10 }
  0x84   :  { %p457_p13 = scmp.lt.s32.totalorder %s1147_s27, 25001  ;;  %s1021_s12 = smov [#allocation2 + $0x5]  }
  0x85   :  { %s148_s14 = sshll.u32 %s1021_s12, 4  ;;  %s1164_s15 = sld [smem:[#allocation5 + $0x6]]  ;;  %s1167_s14 = int_to_ptr.vmem [resolvable:$true] %s148_s14 }
  0x86   :  { %s1434_s27 = smov (!%p115_p12, %s1147_s27), 0  ;;  %s1022_s20 = smov [#allocation2 + $0x6]  }
  0x87   :  { %s1436_s27 = smov (!%p457_p13, %s1434_s27), 25001  ;;  %s167_s21 = sshll.u32 %s1022_s20, 4  ;;  %s1194_s21 = int_to_ptr.vmem [resolvable:$true] %s167_s21 }
  0x88   :  { %p134_p2 = scmp.gt.s32.totalorder %s1158_s11, 0  ;;  %s462_s18 = sshll.u32 %s1436_s27, 4 }
  0x89   :  { %s120_s24 = scalar_lea.hbm %s1416_s3, %s462_s18 }
  0x8a   :  { %s720_s25 = scalar_lea.hbm %s120_s24, 16  ;;  %p723_p7 = scmp.lt.u32.totalorder %s120_s24, %s1416_s3 }
  0x8b   :  { %p153_p5 = scmp.gt.s32.totalorder %s1164_s15, 0  ;;  %p721_p6 = scmp.ne.s32.totalorder %s120_s24, %s720_s25 }
  0x8c   :  { %p724_p3 = scmp.lt.u32.totalorder %s1098_s28, %s720_s25  ;;  %p726_p8 = scmp.lt.u32.totalorder %s720_s25, %s120_s24 }
  0x8e   :  { %p725_p1 = por %p724_p3, %p723_p7 }
  0x90   :  { %p727_p9 = por %p726_p8, %p725_p1 }
  0x92   :  { %p728_p0 = pnand %p727_p9, %p721_p6 }
  0x94   :  { %731 = shalt.err (!%p728_p0)  }
  0x95   :  { %s732_s26 = scalar_lea.vmem %s1160_s10, 16  ;;  %p737_p11 = scmp.lt.s32.totalorder %s1160_s10, %s1081_s13 }
  0x96   :  { %p733_p10 = scmp.ne.s32.totalorder %s1160_s10, %s732_s26  ;;  %p738_p12 = scmp.lt.s32.totalorder %s1107_s6, %s732_s26 }
  0x98   :  { %p739_p13 = por %p738_p12, %p737_p11 }
  0x9a   :  { %p740_p4 = pnand %p739_p13, %p733_p10 }
  0x9c   :  { %743 = shalt.err (!%p740_p4)  }
  0x9d   :  { %132 = dma.hbm_to_vmem [thread:$0]  %s120_s24, 16, %s1160_s10, [#allocation3] }
  0x9e   :  { %s135_s27 = scalar_select %p134_p2, %s1158_s11, 0 }
  0x9f   :  { %s154_s29 = scalar_select %p153_p5, %s1164_s15, 0 }
  0xa0   :  { %p1418_p6 = scmp.lt.s32.totalorder %s1158_s11, 25001  ;;  %p471_p7 = scmp.lt.s32.totalorder %s1164_s15, 25001 }
  0xa1   :  { %s1196_s5 = sld [smem:[#allocation5 + $0x7]] }
  0xa2   :  { %s1438_s27 = smov (!%p1418_p6, %s135_s27), 25001 }
  0xa3   :  { %s469_s30 = sshll.u32 %s1438_s27, 4 }
  0xa4   :  { %s139_s0 = scalar_lea.hbm %s1416_s3, %s469_s30 }
  0xa5   :  { %s744_s9 = scalar_lea.hbm %s139_s0, 16  ;;  %p747_p2 = scmp.lt.u32.totalorder %s139_s0, %s1416_s3 }
  0xa6   :  { %p745_p4 = scmp.ne.s32.totalorder %s139_s0, %s744_s9  ;;  %p748_p3 = scmp.lt.u32.totalorder %s1098_s28, %s744_s9 }
  0xa7   :  { %p750_p1 = scmp.lt.u32.totalorder %s744_s9, %s139_s0 }
  0xa8   :  { %p749_p5 = por %p748_p3, %p747_p2 }
  0xaa   :  { %p751_p8 = por %p750_p1, %p749_p5 }
  0xac   :  { %p752_p9 = pnand %p751_p8, %p745_p4 }
  0xae   :  { %755 = shalt.err (!%p752_p9)  }
  0xaf   :  { %s756_s10 = scalar_lea.vmem %s1167_s14, 16  ;;  %p761_p10 = scmp.lt.s32.totalorder %s1167_s14, %s1081_s13 }
  0xb0   :  { %p757_p0 = scmp.ne.s32.totalorder %s1167_s14, %s756_s10  ;;  %p762_p11 = scmp.lt.s32.totalorder %s1107_s6, %s756_s10 }
  0xb2   :  { %p763_p12 = por %p762_p11, %p761_p10 }
  0xb4   :  { %p764_p13 = pnand %p763_p12, %p757_p0 }
  0xb6   :  { %767 = shalt.err (!%p764_p13)  }
  0xb7   :  { %151 = dma.hbm_to_vmem [thread:$0]  %s139_s0, 16, %s1167_s14, [#allocation3] }
  0xb8   :  { %s1440_s29 = smov (!%p471_p7, %s154_s29), 25001  ;;  %s1023_s11 = smov [#allocation2 + $0x7]  }
  0xb9   :  { %s186_s12 = sshll.u32 %s1023_s11, 4  ;;  %s1213_s18 = sld [smem:[#allocation5 + $0x80]]  ;;  %s1215_s12 = int_to_ptr.vmem [resolvable:$true] %s186_s12 }
  0xba   :  { %s476_s20 = sshll.u32 %s1440_s29, 4  ;;  %p172_p6 = scmp.gt.s32.totalorder %s1196_s5, 0 }
  0xbb   :  { %s158_s24 = scalar_lea.hbm %s1416_s3, %s476_s20 }
  0xbc   :  { %s768_s25 = scalar_lea.hbm %s158_s24, 16  ;;  %p771_p2 = scmp.lt.u32.totalorder %s158_s24, %s1416_s3 }
  0xbd   :  { %p769_p4 = scmp.ne.s32.totalorder %s158_s24, %s768_s25  ;;  %p772_p3 = scmp.lt.u32.totalorder %s1098_s28, %s768_s25 }
  0xbe   :  { %p774_p5 = scmp.lt.u32.totalorder %s768_s25, %s158_s24 }
  0xbf   :  { %p773_p7 = por %p772_p3, %p771_p2 }
  0xc1   :  { %p775_p1 = por %p774_p5, %p773_p7 }
  0xc3   :  { %p776_p8 = pnand %p775_p1, %p769_p4 }
  0xc5   :  { %779 = shalt.err (!%p776_p8)  }
  0xc6   :  { %s780_s14 = scalar_lea.vmem %s1194_s21, 16  ;;  %p785_p0 = scmp.lt.s32.totalorder %s1194_s21, %s1081_s13 }
  0xc7   :  { %p781_p9 = scmp.ne.s32.totalorder %s1194_s21, %s780_s14  ;;  %p786_p10 = scmp.lt.s32.totalorder %s1107_s6, %s780_s14 }
  0xc9   :  { %p787_p11 = por %p786_p10, %p785_p0 }
  0xcb   :  { %p788_p12 = pnand %p787_p11, %p781_p9 }
  0xcd   :  { %791 = shalt.err (!%p788_p12)  }
  0xce   :  { %170 = dma.hbm_to_vmem [thread:$0]  %s158_s24, 16, %s1194_s21, [#allocation3] }
  0xcf   :  { %s173_s15 = scalar_select %p172_p6, %s1196_s5, 0 }
  0xd0   :  { %p478_p13 = scmp.lt.s32.totalorder %s1196_s5, 25001  ;;  %p191_p4 = scmp.gt.s32.totalorder %s1213_s18, 0 }
  0xd1   :  { %p485_p2 = scmp.lt.s32.totalorder %s1213_s18, 25001  ;;  %s1024_s29 = smov [#allocation2 + $0x8]  }
  0xd2   :  { %s1442_s15 = smov (!%p478_p13, %s173_s15), 25001  ;;  %s205_s30 = sshll.u32 %s1024_s29, 4  ;;  %s1241_s30 = int_to_ptr.vmem [resolvable:$true] %s205_s30 }
  0xd3   :  { %s192_s26 = scalar_select %p191_p4, %s1213_s18, 0 }
  0xd4   :  { %s483_s27 = sshll.u32 %s1442_s15, 4 }
  0xd5   :  { %s177_s0 = scalar_lea.hbm %s1416_s3, %s483_s27 }
  0xd6   :  { %s792_s9 = scalar_lea.hbm %s177_s0, 16  ;;  %p795_p6 = scmp.lt.u32.totalorder %s177_s0, %s1416_s3 }
  0xd7   :  { %p793_p3 = scmp.ne.s32.totalorder %s177_s0, %s792_s9  ;;  %p796_p7 = scmp.lt.u32.totalorder %s1098_s28, %s792_s9 }
  0xd8   :  { %p798_p1 = scmp.lt.u32.totalorder %s792_s9, %s177_s0 }
  0xd9   :  { %p797_p5 = por %p796_p7, %p795_p6 }
  0xdb   :  { %p799_p8 = por %p798_p1, %p797_p5 }
  0xdd   :  { %p800_p9 = pnand %p799_p8, %p793_p3 }
  0xdf   :  { %803 = shalt.err (!%p800_p9)  }
  0xe0   :  { %s804_s5 = scalar_lea.vmem %s1215_s12, 16  ;;  %p809_p10 = scmp.lt.s32.totalorder %s1215_s12, %s1081_s13 }
  0xe1   :  { %p805_p0 = scmp.ne.s32.totalorder %s1215_s12, %s804_s5  ;;  %p810_p11 = scmp.lt.s32.totalorder %s1107_s6, %s804_s5 }
  0xe3   :  { %p811_p12 = por %p810_p11, %p809_p10 }
  0xe5   :  { %p812_p13 = pnand %p811_p12, %p805_p0 }
  0xe7   :  { %815 = shalt.err (!%p812_p13)  }
  0xe8   :  { %189 = dma.hbm_to_vmem [thread:$0]  %s177_s0, 16, %s1215_s12, [#allocation3] }
  0xe9   :  { %s1444_s26 = smov (!%p485_p2, %s192_s26), 25001  ;;  %s1255_s19 = sld [smem:[#allocation5 + $0x81]] }
  0xea   :  { %s490_s10 = sshll.u32 %s1444_s26, 4  ;;  %s1025_s11 = smov [#allocation2 + $0x9]  }
  0xeb   :  { %s224_s20 = sshll.u32 %s1025_s11, 4  ;;  %s196_s24 = scalar_lea.hbm %s1416_s3, %s490_s10  ;;  %s1260_s20 = int_to_ptr.vmem [resolvable:$true] %s224_s20 }
  0xec   :  { %s816_s25 = scalar_lea.hbm %s196_s24, 16  ;;  %p819_p3 = scmp.lt.u32.totalorder %s196_s24, %s1416_s3 }
  0xed   :  { %p817_p4 = scmp.ne.s32.totalorder %s196_s24, %s816_s25  ;;  %p820_p6 = scmp.lt.u32.totalorder %s1098_s28, %s816_s25 }
  0xee   :  { %p822_p2 = scmp.lt.u32.totalorder %s816_s25, %s196_s24 }
  0xef   :  { %p821_p7 = por %p820_p6, %p819_p3 }
  0xf1   :  { %p823_p5 = por %p822_p2, %p821_p7 }
  0xf3   :  { %p824_p1 = pnand %p823_p5, %p817_p4 }
  0xf5   :  { %827 = shalt.err (!%p824_p1)  }
  0xf6   :  { %s828_s12 = scalar_lea.vmem %s1241_s30, 16  ;;  %p833_p9 = scmp.lt.s32.totalorder %s1241_s30, %s1081_s13 }
  0xf7   :  { %p829_p8 = scmp.ne.s32.totalorder %s1241_s30, %s828_s12  ;;  %p834_p0 = scmp.lt.s32.totalorder %s1107_s6, %s828_s12 }
  0xf9   :  { %p835_p10 = por %p834_p0, %p833_p9 }
  0xfb   :  { %p836_p11 = pnand %p835_p10, %p829_p8 }
  0xfd   :  { %839 = shalt.err (!%p836_p11)  }
  0xfe   :  { %208 = dma.hbm_to_vmem [thread:$0]  %s196_s24, 16, %s1241_s30, [#allocation3] }
  0xff   :  { %s1272_s18 = sld [smem:[#allocation5 + $0x82]]  ;;  %s1026_s14 = smov [#allocation2 + $0xa]  }
 0x100   :  { %s243_s15 = sshll.u32 %s1026_s14, 4  ;;  %s1274_s26 = sld [smem:[#allocation5 + $0x83]]  ;;  %s1278_s15 = int_to_ptr.vmem [resolvable:$true] %s243_s15 }
 0x101   :  { %p210_p12 = scmp.gt.s32.totalorder %s1255_s19, 0  ;;  %p492_p13 = scmp.lt.s32.totalorder %s1255_s19, 25001 }
 0x102   :  { %s1027_s27 = smov [#allocation2 + $0xb]   ;;  %s1283_s30 = sld [smem:[#allocation5 + $0x84]] }
 0x103   :  { %s1446_s19 = smov (!%p210_p12, %s1255_s19), 0  ;;  %s1281_s29 = sshll.u32 %s1027_s27, 4  ;;  %s1313_s29 = int_to_ptr.vmem [resolvable:$true] %s1281_s29 }
 0x104   :  { %s1448_s19 = smov (!%p492_p13, %s1446_s19), 25001 }
 0x105   :  { %p229_p4 = scmp.gt.s32.totalorder %s1272_s18, 0  ;;  %s497_s7 = sshll.u32 %s1448_s19, 4 }
 0x106   :  { %p248_p6 = scmp.gt.s32.totalorder %s1274_s26, 0  ;;  %s215_s9 = scalar_lea.hbm %s1416_s3, %s497_s7 }
 0x107   :  { %s840_s1 = scalar_lea.hbm %s215_s9, 16  ;;  %p843_p5 = scmp.lt.u32.totalorder %s215_s9, %s1416_s3 }
 0x108   :  { %p841_p2 = scmp.ne.s32.totalorder %s215_s9, %s840_s1  ;;  %p844_p1 = scmp.lt.u32.totalorder %s1098_s28, %s840_s1 }
 0x109   :  { %p846_p9 = scmp.lt.u32.totalorder %s840_s1, %s215_s9 }
 0x10a   :  { %p845_p8 = por %p844_p1, %p843_p5 }
 0x10c   :  { %p847_p0 = por %p846_p9, %p845_p8 }
 0x10e   :  { %p848_p10 = pnand %p847_p0, %p841_p2 }
 0x110   :  { %851 = shalt.err (!%p848_p10)  }
 0x111   :  { %s852_s19 = scalar_lea.vmem %s1260_s20, 16  ;;  %p857_p12 = scmp.lt.s32.totalorder %s1260_s20, %s1081_s13 }
 0x112   :  { %p853_p11 = scmp.ne.s32.totalorder %s1260_s20, %s852_s19  ;;  %p858_p13 = scmp.lt.s32.totalorder %s1107_s6, %s852_s19 }
 0x114   :  { %p859_p7 = por %p858_p13, %p857_p12 }
 0x116   :  { %p860_p3 = pnand %p859_p7, %p853_p11 }
 0x118   :  { %863 = shalt.err (!%p860_p3)  }
 0x119   :  { %227 = dma.hbm_to_vmem [thread:$0]  %s215_s9, 16, %s1260_s20, [#allocation3] }
 0x11a   :  { %s230_s10 = scalar_select %p229_p4, %s1272_s18, 0 }
 0x11b   :  { %s249_s11 = scalar_select %p248_p6, %s1274_s26, 0 }
 0x11c   :  { %p1419_p2 = scmp.lt.s32.totalorder %s1272_s18, 25001  ;;  %p1420_p5 = scmp.lt.s32.totalorder %s1274_s26, 25001 }
 0x11e   :  { %s1450_s10 = smov (!%p1419_p2, %s230_s10), 25001  ;;  %s1452_s11 = smov (!%p1420_p5, %s249_s11), 25001 }
 0x11f   :  { %s504_s22 = sshll.u32 %s1450_s10, 4  ;;  %s511_s16 = sshll.u32 %s1452_s11, 4 }
 0x120   :  { %s234_s25 = scalar_lea.hbm %s1416_s3, %s504_s22 }
 0x121   :  { %s864_s17 = scalar_lea.hbm %s234_s25, 16  ;;  %p867_p4 = scmp.lt.u32.totalorder %s234_s25, %s1416_s3 }
 0x122   :  { %p865_p3 = scmp.ne.s32.totalorder %s234_s25, %s864_s17  ;;  %p868_p7 = scmp.lt.u32.totalorder %s1098_s28, %s864_s17 }
 0x123   :  { %p870_p1 = scmp.lt.u32.totalorder %s864_s17, %s234_s25 }
 0x124   :  { %p869_p6 = por %p868_p7, %p867_p4 }
 0x126   :  { %p871_p8 = por %p870_p1, %p869_p6 }
 0x128   :  { %p872_p9 = pnand %p871_p8, %p865_p3 }
 0x12a   :  { %875 = shalt.err (!%p872_p9)  }
 0x12b   :  { %s876_s18 = scalar_lea.vmem %s1278_s15, 16  ;;  %p881_p10 = scmp.lt.s32.totalorder %s1278_s15, %s1081_s13 }
 0x12c   :  { %p877_p0 = scmp.ne.s32.totalorder %s1278_s15, %s876_s18  ;;  %p882_p11 = scmp.lt.s32.totalorder %s1107_s6, %s876_s18 }
 0x12e   :  { %p883_p12 = por %p882_p11, %p881_p10 }
 0x130   :  { %p884_p13 = pnand %p883_p12, %p877_p0 }
 0x132   :  { %887 = shalt.err (!%p884_p13)  }
 0x133   :  { %246 = dma.hbm_to_vmem [thread:$0]  %s234_s25, 16, %s1278_s15, [#allocation3] }
 0x134   :  { %s253_s27 = scalar_lea.hbm %s1416_s3, %s511_s16  ;;  %p267_p2 = scmp.gt.s32.totalorder %s1283_s30, 0 }
 0x135   :  { %s888_s7 = scalar_lea.hbm %s253_s27, 16  ;;  %p891_p3 = scmp.lt.u32.totalorder %s253_s27, %s1416_s3 }
 0x136   :  { %p889_p5 = scmp.ne.s32.totalorder %s253_s27, %s888_s7  ;;  %p892_p4 = scmp.lt.u32.totalorder %s1098_s28, %s888_s7 }
 0x137   :  { %p894_p6 = scmp.lt.u32.totalorder %s888_s7, %s253_s27 }
 0x138   :  { %p893_p7 = por %p892_p4, %p891_p3 }
 0x13a   :  { %p895_p1 = por %p894_p6, %p893_p7 }
 0x13c   :  { %p896_p8 = pnand %p895_p1, %p889_p5 }
 0x13e   :  { %899 = shalt.err (!%p896_p8)  }
 0x13f   :  { %s900_s15 = scalar_lea.vmem %s1313_s29, 16  ;;  %p905_p0 = scmp.lt.s32.totalorder %s1313_s29, %s1081_s13 }
 0x140   :  { %p901_p9 = scmp.ne.s32.totalorder %s1313_s29, %s900_s15  ;;  %p906_p10 = scmp.lt.s32.totalorder %s1107_s6, %s900_s15 }
 0x142   :  { %p907_p11 = por %p906_p10, %p905_p0 }
 0x144   :  { %p908_p12 = pnand %p907_p11, %p901_p9 }
 0x146   :  { %911 = shalt.err (!%p908_p12)  }
 0x147   :  { %265 = dma.hbm_to_vmem [thread:$0]  %s253_s27, 16, %s1313_s29, [#allocation3] }
 0x148   :  { %s268_s9 = scalar_select %p267_p2, %s1283_s30, 0 }
 0x149   :  { %p513_p13 = scmp.lt.s32.totalorder %s1283_s30, 25001  ;;  %s1028_s1 = smov [#allocation2 + $0xc]  }
 0x14a   :  { %s281_s21 = sshll.u32 %s1028_s1, 4  ;;  %s1346_s5 = sld [smem:[#allocation5 + $0x85]]  ;;  %s282_s21 = int_to_ptr.vmem [resolvable:$true] %s281_s21 }
 0x14b   :  { %s1454_s9 = smov (!%p513_p13, %s268_s9), 25001  ;;  %s1029_s23 = smov [#allocation2 + $0xd]  }
 0x14c   :  { %s518_s19 = sshll.u32 %s1454_s9, 4  ;;  %s300_s24 = sshll.u32 %s1029_s23, 4  ;;  %s301_s24 = int_to_ptr.vmem [resolvable:$true] %s300_s24 }
 0x14d   :  { %s272_s22 = scalar_lea.hbm %s1416_s3, %s518_s19 }
 0x14e   :  { %s912_s25 = scalar_lea.hbm %s272_s22, 16  ;;  %p915_p2 = scmp.lt.u32.totalorder %s272_s22, %s1416_s3 }
 0x14f   :  { %p913_p5 = scmp.ne.s32.totalorder %s272_s22, %s912_s25  ;;  %p916_p3 = scmp.lt.u32.totalorder %s1098_s28, %s912_s25 }
 0x150   :  { %p918_p7 = scmp.lt.u32.totalorder %s912_s25, %s272_s22 }
 0x151   :  { %p917_p4 = por %p916_p3, %p915_p2 }
 0x153   :  { %p919_p6 = por %p918_p7, %p917_p4 }
 0x155   :  { %p920_p1 = pnand %p919_p6, %p913_p5 }
 0x157   :  { %923 = shalt.err (!%p920_p1)  }
 0x158   :  { %s924_s30 = scalar_lea.vmem %s282_s21, 16  ;;  %p929_p9 = scmp.lt.s32.totalorder %s282_s21, %s1081_s13 }
 0x159   :  { %p925_p8 = scmp.ne.s32.totalorder %s282_s21, %s924_s30  ;;  %p930_p0 = scmp.lt.s32.totalorder %s1107_s6, %s924_s30 }
 0x15b   :  { %p931_p10 = por %p930_p0, %p929_p9 }
 0x15d   :  { %p932_p11 = pnand %p931_p10, %p925_p8 }
 0x15f   :  { %935 = shalt.err (!%p932_p11)  }
 0x160   :  { %284 = dma.hbm_to_vmem [thread:$0]  %s272_s22, 16, %s282_s21, [#allocation3] }
 0x161   :  { %p286_p12 = scmp.gt.s32.totalorder %s1346_s5, 0  ;;  %p520_p13 = scmp.lt.s32.totalorder %s1346_s5, 25001 }
 0x162   :  { %s1359_s17 = sld [smem:[#allocation5 + $0x86]]  ;;  %s1030_s12 = smov [#allocation2 + $0xe]  }
 0x163   :  { %s1456_s5 = smov (!%p286_p12, %s1346_s5), 0  ;;  %s319_s20 = sshll.u32 %s1030_s12, 4  ;;  %s1364_s20 = int_to_ptr.vmem [resolvable:$true] %s319_s20 }
 0x164   :  { %s1362_s18 = sld [smem:[#allocation5 + $0x87]]  ;;  %s1458_s5 = smov (!%p520_p13, %s1456_s5), 25001 }
 0x165   :  { %s525_s14 = sshll.u32 %s1458_s5, 4 }
 0x166   :  { %s291_s7 = scalar_lea.hbm %s1416_s3, %s525_s14 }
 0x167   :  { %s936_s8 = scalar_lea.hbm %s291_s7, 16  ;;  %p939_p3 = scmp.lt.u32.totalorder %s291_s7, %s1416_s3 }
 0x168   :  { %p305_p5 = scmp.gt.s32.totalorder %s1359_s17, 0  ;;  %p937_p2 = scmp.ne.s32.totalorder %s291_s7, %s936_s8 }
 0x169   :  { %p940_p4 = scmp.lt.u32.totalorder %s1098_s28, %s936_s8  ;;  %p942_p6 = scmp.lt.u32.totalorder %s936_s8, %s291_s7 }
 0x16b   :  { %p941_p7 = por %p940_p4, %p939_p3 }
 0x16d   :  { %p943_p1 = por %p942_p6, %p941_p7 }
 0x16f   :  { %p944_p8 = pnand %p943_p1, %p937_p2 }
 0x171   :  { %947 = shalt.err (!%p944_p8)  }
 0x172   :  { %s948_s9 = scalar_lea.vmem %s301_s24, 16  ;;  %p953_p0 = scmp.lt.s32.totalorder %s301_s24, %s1081_s13 }
 0x173   :  { %p949_p9 = scmp.ne.s32.totalorder %s301_s24, %s948_s9  ;;  %p954_p10 = scmp.lt.s32.totalorder %s1107_s6, %s948_s9 }
 0x175   :  { %p955_p11 = por %p954_p10, %p953_p0 }
 0x177   :  { %p956_p12 = pnand %p955_p11, %p949_p9 }
 0x179   :  { %959 = shalt.err (!%p956_p12)  }
 0x17a   :  { %303 = dma.hbm_to_vmem [thread:$0]  %s291_s7, 16, %s301_s24, [#allocation3] }
 0x17b   :  { %s306_s1 = scalar_select %p305_p5, %s1359_s17, 0 }
 0x17c   :  { %p527_p13 = scmp.lt.s32.totalorder %s1359_s17, 25001  ;;  %p324_p2 = scmp.gt.s32.totalorder %s1362_s18, 0 }
 0x17d   :  { %p534_p3 = scmp.lt.s32.totalorder %s1362_s18, 25001  ;;  %s1031_s22 = smov [#allocation2 + $0xf]  }
 0x17e   :  { %s1460_s1 = smov (!%p527_p13, %s306_s1), 25001  ;;  %s338_s23 = sshll.u32 %s1031_s22, 4  ;;  %s339_s23 = int_to_ptr.vmem [resolvable:$true] %s338_s23 }
 0x17f   :  { %s325_s21 = scalar_select %p324_p2, %s1362_s18, 0 }
 0x180   :  { %s532_s5 = sshll.u32 %s1460_s1, 4 }
 0x181   :  { %s310_s11 = scalar_lea.hbm %s1416_s3, %s532_s5 }
 0x182   :  { %s960_s24 = scalar_lea.hbm %s310_s11, 16  ;;  %p963_p7 = scmp.lt.u32.totalorder %s310_s11, %s1416_s3 }
 0x183   :  { %p961_p4 = scmp.ne.s32.totalorder %s310_s11, %s960_s24  ;;  %p964_p6 = scmp.lt.u32.totalorder %s1098_s28, %s960_s24 }
 0x184   :  { %p966_p1 = scmp.lt.u32.totalorder %s960_s24, %s310_s11 }
 0x185   :  { %p965_p5 = por %p964_p6, %p963_p7 }
 0x187   :  { %p967_p8 = por %p966_p1, %p965_p5 }
 0x189   :  { %p968_p9 = pnand %p967_p8, %p961_p4 }
 0x18b   :  { %971 = shalt.err (!%p968_p9)  }
 0x18c   :  { %s972_s29 = scalar_lea.vmem %s1364_s20, 16  ;;  %p977_p10 = scmp.lt.s32.totalorder %s1364_s20, %s1081_s13 }
 0x18d   :  { %p973_p0 = scmp.ne.s32.totalorder %s1364_s20, %s972_s29  ;;  %p978_p11 = scmp.lt.s32.totalorder %s1107_s6, %s972_s29 }
 0x18f   :  { %p979_p12 = por %p978_p11, %p977_p10 }
 0x191   :  { %p980_p13 = pnand %p979_p12, %p973_p0 }
 0x193   :  { %983 = shalt.err (!%p980_p13)  }
 0x194   :  { %322 = dma.hbm_to_vmem [thread:$0]  %s310_s11, 16, %s1364_s20, [#allocation3] }
 0x195   :  { %s1462_s21 = smov (!%p534_p3, %s325_s21), 25001 }
 0x196   :  { %s539_s30 = sshll.u32 %s1462_s21, 4 }
 0x197   :  { %s329_s14 = scalar_lea.hbm %s1416_s3, %s539_s30 }
 0x198   :  { %s984_s26 = scalar_lea.hbm %s329_s14, 16  ;;  %p987_p4 = scmp.lt.u32.totalorder %s329_s14, %s1416_s3 }
 0x199   :  { %p985_p2 = scmp.ne.s32.totalorder %s329_s14, %s984_s26  ;;  %p988_p7 = scmp.lt.u32.totalorder %s1098_s28, %s984_s26 }
 0x19a   :  { %p990_p5 = scmp.lt.u32.totalorder %s984_s26, %s329_s14 }
 0x19b   :  { %p989_p6 = por %p988_p7, %p987_p4 }
 0x19d   :  { %p991_p1 = por %p990_p5, %p989_p6 }
 0x19f   :  { %p992_p8 = pnand %p991_p1, %p985_p2 }
 0x1a1   :  { %995 = shalt.err (!%p992_p8)  }
 0x1a2   :  { %s996_s20 = scalar_lea.vmem %s339_s23, 16  ;;  %p1001_p9 = scmp.lt.s32.totalorder %s339_s23, %s1081_s13 }
 0x1a3   :  { %p997_p3 = scmp.ne.s32.totalorder %s339_s23, %s996_s20  ;;  %p1002_p0 = scmp.lt.s32.totalorder %s1107_s6, %s996_s20 }
 0x1a5   :  { %p1003_p10 = por %p1002_p0, %p1001_p9 }
 0x1a7   :  { %p1004_p11 = pnand %p1003_p10, %p997_p3 }
 0x1a9   :  { %1007 = shalt.err (!%p1004_p11)  }
 0x1aa   :  { %341 = dma.hbm_to_vmem [thread:$0]  %s329_s14, 16, %s339_s23, [#allocation3] }
 0x1ab   :  { %1012 = dma.done.wait [#allocation3], 256 }
 0x1ac   :  { %1013 = vsyncadd [#allocation3], 4294967040  ;;  %v346_v0 = vld [vmem:[#allocation2] sm:$0xff]  ;;  %v347_v1 = vld [vmem:[#allocation2 + $0x8] sm:$0xff]  ;;  %vm374_vm0 = vcmask 1041409   ;;  %vm377_vm1 = vcmask 1041408   ;;  %v381_v22 = vstv %s1415_s2 }
 0x1ad   :  { %v348_v2 = vrot.slane %v346_v0, 4  ;;  %v354_v3 = vrot.slane %v347_v1, 4  ;;  %v540_v14 = vld [vmem:[#allocation8] ss:$0 sm:$0xff]  ;;  %vm383_vm2 = vcmask 1024  }
 0x1af   :  { %v349_v4 = vadd.f32 %v348_v2, %v346_v0  ;;  %v355_v5 = vadd.f32 %v354_v3, %v347_v1 }
 0x1b1   :  { %v350_v6 = vrot.slane %v349_v4, 2  ;;  %v356_v7 = vrot.slane %v355_v5, 2 }
 0x1b3   :  { %v351_v8 = vadd.f32 %v350_v6, %v349_v4  ;;  %v357_v9 = vadd.f32 %v356_v7, %v355_v5 }
 0x1b5   :  { %v352_v10 = vrot.slane %v351_v8, 1  ;;  %v358_v11 = vrot.slane %v357_v9, 1 }
 0x1b7   :  { %v353_v12 = vadd.f32 %v352_v10, %v351_v8  ;;  %v359_v13 = vadd.f32 %v358_v11, %v357_v9 }
 0x1b9   :  { %v360_v15 = vmul.f32 0.125, %v353_v12  ;;  %v361_v16 = vmul.f32 0.125, %v359_v13 }
 0x1bb   :  { %v369_v17 = vmul.f32 %v540_v14, %v360_v15  ;;  %v370_v18 = vmul.f32 %v540_v14, %v361_v16 }
 0x1bd   :  { %v373_v19 = vrot.slane %v370_v18, 7 }
 0x1bf   :  { %v375_v20 = vsel %vm374_vm0, %v373_v19, %v369_v17 }
 0x1c0   :  { %v378_v21 = vsel %vm377_vm1, %v375_v20, 0.0 }
 0x1c1   :  { %379 = vadd.xlane.f32.xlu0 %v378_v21 }
 0x24e   :  { %v380_v23 = vpop.xlane.xlu0 %379 }
 0x24f   :  { %v382_v24 = vadd.f32 %v381_v22, %v380_v23 }
 0x251   :  { %384 = vst.msk [vmem:[%s1417_s4] sm:$0x3] %vm383_vm2, %v382_v24 }
 0x252   :  { %389 = vsyncpa [#allocation6], 1 }
 0x253   :  { %390 = vsyncpa [#allocation7], 1 }
 0x254   :  { %391 = vsyncmov [#allocation3] }
 0x257   :  { %s392_s18 = vpop.sfrf %391 }
 0x258   :  { %p541_p12 = scmp.ne.s32.totalorder %s392_s18, 0 }
 0x25a   :  { %396 = shalt.err (%p541_p12)  }

</bundles_post_ra>
